<compile_context>
chip_gen: v6e
topology: v6e:2x2x1
jax: 0.10.0
libtpu: 0.0.40
codegen_flags: <defaults>
</compile_context>

<pallas_src>
import jax
import jax.numpy as jnp
from jax.experimental import pallas as pl
from jax.experimental.pallas import tpu as pltpu

IN_FEATURES = 8      # energy.csv has 8 feature columns
HIDDEN = 50
OUT_FEATURES = 1     # single regression target

# Default batch tile (lanes) for the tiled / pipelined path. 8192 keeps the
# double-buffered bf16 input tiles + the (50, TB) f32 hidden activation well
# under the 32 MiB scoped-VMEM default on every generation (v5e / v6e / v7x).
DEFAULT_BATCH_TILE = 8192
# Below this batch size a single full-array block beats paying the
# ~0.35 us per-grid-step pipeline overhead.
DEFAULT_SMALL_BATCH_MAX = 4096


def _mlp_kernel(x_ref, w1_ref, b1_ref, w2_ref, b2_ref, o_ref):
    """Feature-major MLP tile.

    x_ref : (IN_FEATURES, TB)        storage dtype (bf16), batch on lanes
    w1_ref: (HIDDEN, IN_FEATURES)    storage dtype (bf16)
    b1_ref: (HIDDEN, 1)              f32
    w2_ref: (OUT_FEATURES, HIDDEN)   storage dtype (bf16)
    b2_ref: (1, 1)                   f32, SMEM scalar
    o_ref : (OUT_FEATURES, TB)       f32
    """
    # Layer 1 on the MXU with f32 accumulation: (50, 8) @ (8, TB) -> (50, TB).
    h = jnp.dot(w1_ref[...], x_ref[...], preferred_element_type=jnp.float32)
    # Bias + ReLU in f32 on the VPU (b1 broadcasts along lanes).
    h = jnp.maximum(h + b1_ref[...], 0.0)
    # Layer 2: (1, 50) @ (50, TB) -> (1, TB), kept entirely in f32.
    y = jnp.dot(w2_ref[...].astype(jnp.float32), h,
                preferred_element_type=jnp.float32)
    # b2 is a single scalar living in SMEM.
    o_ref[...] = (y + b2_ref[0, 0]).astype(o_ref.dtype)


def _forward_feature_major(xt, w1, b1_col, w2, b2_11, batch_tile):
    """xt: (IN_FEATURES, Bp) with Bp % batch_tile == 0. Returns (1, Bp) f32."""
    in_f, bp = xt.shape
    assert bp % batch_tile == 0
    num_tiles = bp // batch_tile
    return pl.pallas_call(
        _mlp_kernel,
        out_shape=jax.ShapeDtypeStruct((OUT_FEATURES, bp), jnp.float32),
        grid=(num_tiles,),
        in_specs=[
            # x tile: batch on lanes -> lane-dense reads, auto double-buffered.
            pl.BlockSpec((in_f, batch_tile), lambda i: (0, i)),
            # Weights / hidden bias: constant index_map -> DMA'd once,
            # stay VMEM-resident across all grid steps.
            pl.BlockSpec(w1.shape, lambda i: (0, 0)),
            pl.BlockSpec(b1_col.shape, lambda i: (0, 0)),
            pl.BlockSpec(w2.shape, lambda i: (0, 0)),
            # b2 is one float -> SMEM scalar; no padded VMEM tile wasted on it.
            pl.BlockSpec(memory_space=pltpu.MemorySpace.SMEM),
        ],
        # Lane-dense output tile (unmasked stores when batch_tile % 128 == 0).
        out_specs=pl.BlockSpec((OUT_FEATURES, batch_tile), lambda i: (0, i)),
        compiler_params=pltpu.CompilerParams(
            # Batch tiles are independent -> shard across TensorCores on v7x.
            dimension_semantics=("parallel",),
        ),
    )(xt, w1, b1_col, w2, b2_11)


def net_forward(x, w1, b1, w2, b2, *, storage_dtype=jnp.bfloat16,
                batch_tile=DEFAULT_BATCH_TILE,
                small_batch_max=DEFAULT_SMALL_BATCH_MAX):
    """Forward pass of Net.

    x: (B, 8) f32. Weights in PyTorch layout:
      w1: (50, 8), b1: (50,), w2: (1, 50), b2: (1,).
    Returns (B, 1) f32.
    """
    b = x.shape[0]

    # Feature-major (batch on lanes) + bf16 storage for the DMA-heavy operands.
    # TODO(synk): in production keep x feature-major and params pre-cast
    # upstream in the data pipeline so this transpose/cast is not paid per call.
    xt = x.T.astype(storage_dtype)                        # (8, B)
    w1_s = w1.astype(storage_dtype)                       # (50, 8)
    w2_s = w2.astype(storage_dtype)                       # (1, 50)
    b1_col = b1.reshape(HIDDEN, 1).astype(jnp.float32)    # (50, 1)
    b2_11 = b2.reshape(1, 1).astype(jnp.float32)          # (1, 1) -> SMEM

    if b <= max(small_batch_max, 1):
        # Small-batch fast path: one full-array block, no grid-step overhead.
        tile, padded = b, b
    else:
        tile = batch_tile
        padded = pl.cdiv(b, tile) * tile
    if padded != b:
        xt = jnp.pad(xt, ((0, 0), (0, padded - b)))

    y = _forward_feature_major(xt, w1_s, b1_col, w2_s, b2_11, tile)  # (1, Bp)
    # (1, B) -> (B, 1): row-major contiguous, so this is a cheap reshape.
    return y[:, :b].reshape(b, OUT_FEATURES)


def reference_forward(x, w1, b1, w2, b2, storage_dtype=jnp.bfloat16):
    """Plain-JAX reference with the same storage-dtype rounding as the kernel."""
    xs = x.astype(storage_dtype).astype(jnp.float32)
    w1s = w1.astype(storage_dtype).astype(jnp.float32)
    w2s = w2.astype(storage_dtype).astype(jnp.float32)
    h = jnp.maximum(jnp.dot(xs, w1s.T) + b1, 0.0)
    return jnp.dot(h, w2s.T) + b2


def init_params(key):
    """Deterministic init, PyTorch Linear layout and default uniform bounds."""
    k1, k2, k3, k4 = jax.random.split(key, 4)
    bound1 = 1.0 / jnp.sqrt(IN_FEATURES)
    bound2 = 1.0 / jnp.sqrt(HIDDEN)
    w1 = jax.random.uniform(k1, (HIDDEN, IN_FEATURES), jnp.float32, -bound1, bound1)
    b1 = jax.random.uniform(k2, (HIDDEN,), jnp.float32, -bound1, bound1)
    w2 = jax.random.uniform(k3, (OUT_FEATURES, HIDDEN), jnp.float32, -bound2, bound2)
    b2 = jax.random.uniform(k4, (OUT_FEATURES,), jnp.float32, -bound2, bound2)
    return w1, b1, w2, b2


if __name__ == "__main__":
    key = jax.random.PRNGKey(0)
    k_x, k_p, k_x2 = jax.random.split(key, 3)

    w1, b1, w2, b2 = init_params(k_p)

    # 1) Small batch (matches the toy spec): single-block fast path.
    batch = 8
    x = jax.random.normal(k_x, (batch, IN_FEATURES), jnp.float32)
    out = jax.block_until_ready(net_forward(x, w1, b1, w2, b2))
    ref = reference_forward(x, w1, b1, w2, b2)
    assert out.shape == (batch, OUT_FEATURES)
    assert jnp.allclose(out, ref, atol=1e-3, rtol=1e-3), \
        float(jnp.max(jnp.abs(out - ref)))

    # 2) Larger batch: exercises the tiled / pipelined grid path including the
    #    ragged-last-tile padding (small tile here just to keep the test quick;
    #    real runs use the 8192-lane default).
    batch2 = 1000
    x2 = jax.random.normal(k_x2, (batch2, IN_FEATURES), jnp.float32)
    out2 = jax.block_until_ready(
        net_forward(x2, w1, b1, w2, b2, batch_tile=256, small_batch_max=0))
    ref2 = reference_forward(x2, w1, b1, w2, b2)
    assert out2.shape == (batch2, OUT_FEATURES)
    assert jnp.allclose(out2, ref2, atol=1e-3, rtol=1e-3), \
        float(jnp.max(jnp.abs(out2 - ref2)))

    print("KERNEL_OK")
</pallas_src>

<mosaic_0001>
module attributes {stable_mosaic.version = 11 : i64} {
  func.func @_mlp_kernel(%arg0: i32, %arg1: memref<8x8xbf16, #tpu.memory_space<vmem>>, %arg2: memref<50x8xbf16, #tpu.memory_space<vmem>>, %arg3: memref<50x1xf32, #tpu.memory_space<vmem>>, %arg4: memref<1x50xbf16, #tpu.memory_space<vmem>>, %arg5: memref<1x1xf32, #tpu.memory_space<smem>>, %arg6: memref<1x8xf32, #tpu.memory_space<vmem>>) attributes {dimension_semantics = [#tpu.dimension_semantics<parallel>], iteration_bounds = array<i64: 1>, scalar_prefetch = 0 : i64, scratch_operands = 0 : i64, tpu.core_type = #tpu.core_type<tc>, window_params = [{transform_indices = @transform_0, window_bounds = array<i64: 8, 8>}, {pipeline_mode = #tpu.pipeline_mode<synchronous>, transform_indices = @transform_1, window_bounds = array<i64: 50, 8>}, {pipeline_mode = #tpu.pipeline_mode<synchronous>, transform_indices = @transform_2, window_bounds = array<i64: 50, 1>}, {pipeline_mode = #tpu.pipeline_mode<synchronous>, transform_indices = @transform_3, window_bounds = array<i64: 1, 50>}, {transform_indices = @transform_4, window_bounds = array<i64: 1, 1>}, {transform_indices = @transform_5, window_bounds = array<i64: 1, 8>}]} {
    %c0 = arith.constant 0 : index
    %c0_0 = arith.constant 0 : index
    %0 = vector.load %arg2[%c0, %c0_0] : memref<50x8xbf16, #tpu.memory_space<vmem>>, vector<50x8xbf16>
    %c0_1 = arith.constant 0 : index
    %c0_2 = arith.constant 0 : index
    %1 = vector.load %arg1[%c0_1, %c0_2] : memref<8x8xbf16, #tpu.memory_space<vmem>>, vector<8x8xbf16>
    %cst = arith.constant dense<0.000000e+00> : vector<50x8xf32>
    %2 = tpu.matmul %0, %1, %cst {dimension_numbers = #tpu.dot_dimension_numbers<[1], [0], [0], [1], [0, 0, 1, 1], [], []>} : vector<50x8xbf16>, vector<8x8xbf16>, vector<50x8xf32> -> vector<50x8xf32>
    %c0_3 = arith.constant 0 : index
    %c0_4 = arith.constant 0 : index
    %3 = vector.load %arg3[%c0_3, %c0_4] : memref<50x1xf32, #tpu.memory_space<vmem>>, vector<50x1xf32>
    %4 = vector.broadcast %3 : vector<50x1xf32> to vector<50x8xf32>
    %5 = arith.addf %2, %4 : vector<50x8xf32>
    %cst_5 = arith.constant 0.000000e+00 : f32
    %6 = vector.broadcast %cst_5 : f32 to vector<50x8xf32>
    %7 = arith.maximumf %5, %6 : vector<50x8xf32>
    %c0_6 = arith.constant 0 : index
    %c0_7 = arith.constant 0 : index
    %8 = vector.load %arg4[%c0_6, %c0_7] : memref<1x50xbf16, #tpu.memory_space<vmem>>, vector<1x50xbf16>
    %9 = arith.extf %8 : vector<1x50xbf16> to vector<1x50xf32>
    %cst_8 = arith.constant dense<0.000000e+00> : vector<1x8xf32>
    %10 = tpu.matmul %9, %7, %cst_8 {dimension_numbers = #tpu.dot_dimension_numbers<[1], [0], [0], [1], [0, 0, 1, 1], [], []>} : vector<1x50xf32>, vector<50x8xf32>, vector<1x8xf32> -> vector<1x8xf32>
    %c0_9 = arith.constant 0 : index
    %c0_10 = arith.constant 0 : index
    %11 = memref.load %arg5[%c0_9, %c0_10] : memref<1x1xf32, #tpu.memory_space<smem>>
    %12 = vector.broadcast %11 : f32 to vector<1x8xf32>
    %13 = arith.addf %10, %12 : vector<1x8xf32>
    %c0_11 = arith.constant 0 : index
    %c0_12 = arith.constant 0 : index
    %14 = vector.load %arg6[%c0_11, %c0_12] : memref<1x8xf32, #tpu.memory_space<vmem>>, vector<1x8xf32>
    tpu.vector_store %arg6[%c0_11, %c0_12], %13 {strides = array<i32>} : memref<1x8xf32, #tpu.memory_space<vmem>>, vector<1x8xf32>,
    return
  }
  func.func @transform_0(%arg0: i32) -> (i32, i32) {
    %c0_i32 = arith.constant 0 : i32
    %c0_i32_0 = arith.constant 0 : i32
    return %c0_i32, %arg0 : i32, i32
  }
  func.func @transform_1(%arg0: i32) -> (i32, i32) {
    %c0_i32 = arith.constant 0 : i32
    %c0_i32_0 = arith.constant 0 : i32
    %c0_i32_1 = arith.constant 0 : i32
    return %c0_i32, %c0_i32_0 : i32, i32
  }
  func.func @transform_2(%arg0: i32) -> (i32, i32) {
    %c0_i32 = arith.constant 0 : i32
    %c0_i32_0 = arith.constant 0 : i32
    %c0_i32_1 = arith.constant 0 : i32
    return %c0_i32, %c0_i32_0 : i32, i32
  }
  func.func @transform_3(%arg0: i32) -> (i32, i32) {
    %c0_i32 = arith.constant 0 : i32
    %c0_i32_0 = arith.constant 0 : i32
    %c0_i32_1 = arith.constant 0 : i32
    return %c0_i32, %c0_i32_0 : i32, i32
  }
  func.func @transform_4(%arg0: i32) -> (i32, i32) {
    %c0_i32 = arith.constant 0 : i32
    %c0_i32_0 = arith.constant 0 : i32
    %c0_i32_1 = arith.constant 0 : i32
    return %c0_i32, %c0_i32_0 : i32, i32
  }
  func.func @transform_5(%arg0: i32) -> (i32, i32) {
    %c0_i32 = arith.constant 0 : i32
    %c0_i32_0 = arith.constant 0 : i32
    return %c0_i32, %arg0 : i32, i32
  }
}

</mosaic_0001>

<bundles_post_ra>
// kernel: tpu_custom_call.1
= control target key start
LH: loop header
LB: loop body
LE: loop exit
PB: predicated region body
PF: predicated region fallthrough
CT: control target
= control target key end

     0   :  { %vm104_vm0 = vcmask 1043456   ;;  %vm91_vm1 = vcmask 64512   ;;  %v360_v5 = vmov 0   ;;  %s443_s0 = inlined_call_operand.vmem [shape: bf16[8,8], index: 0, kind: input, shape index: {}]   ;;  %s444_s1 = inlined_call_operand.vmem [shape: bf16[50,8], index: 1, kind: input, shape index: {}]   ;;  %s445_s2 = inlined_call_operand.vmem [shape: f32[50,1], index: 2, kind: input, shape index: {}]   ;;  %s446_s3 = inlined_call_operand.vmem [shape: bf16[1,50], index: 3, kind: input, shape index: {}]   ;;  %s447_s4 = inlined_call_operand.<no memory space> [shape: f32[1,1], index: 4, kind: input, shape index: {}]   ;;  %s448_s5 = inlined_call_operand.hbm [shape: f32[1,8], index: 5, kind: output, shape index: {}]  }
   0x1   :  { %v30_v0 = vld [vmem:[%s443_s0] sm:$0xf]  ;;  %v335_v3 = vld [vmem:[%s444_s1 + $0x8] sm:$0xff]   ;;  %v336_v4 = vld [vmem:[%s444_s1 + $0x10] sm:$0xff]   ;;  %332 = vset.pattern.permute.xlu0 %v360_v5  ;;  %333 = vset.pattern.permute.xlu1 %v360_v5 }
   0x2   :  { %v334_v1 = vld [vmem:[%s444_s1] sm:$0xff]   ;;  %327 = vmatprep.subr.msk.bf16.mxu0 %vm104_vm0, %v30_v0  ;;  %v106_v2 = vsel %vm104_vm0, %v30_v0, 0  ;;  %v37_v6 = vld [vmem:[%s445_s2 + $0x30] sm:$0x3]  ;;  %v36_v8 = vld [vmem:[%s445_s2 + $0x28] sm:$0xff] }
   0x3   :  { %301 = vmatpush3.bf16.msra.mxu0 %v106_v2  ;;  %302 = vmatprep.mubr.msk.bf16.mxu0 %vm91_vm1, %v334_v1  ;;  %v35_v7 = vld [vmem:[%s445_s2 + $0x20] sm:$0xff] }
   0x4   :  { %70 = vperm.xlu0 %332, %v37_v6   ;;  %60 = vperm.xlu1 %333, %v35_v7  }
   0x6   :  { %303 = vmatmul.mubr.msk.bf16.vlgmr.msra.gmra.mxu0 %vm91_vm1, %v335_v3 }
   0x7   :  { %306 = vmatprep.mubr.msk.bf16.mxu0 %vm91_vm1, %v336_v4 }
   0x8   :  { %11 = vsyncpa [#allocation4], 0  ;;  %v34_v9 = vld [vmem:[%s445_s2 + $0x18] sm:$0xff]  ;;  %65 = vperm.xlu0 %332, %v36_v8   ;;  %v33_v11 = vld [vmem:[%s445_s2 + $0x10] sm:$0xff]  ;;  %v361_v14 = vmov 0.0   ;;  %vm362_vm2 = vmmov 0   ;;  %v182_v46 = vstv %s447_s4 }
   0x9   :  { %v337_v10 = vld [vmem:[%s444_s1 + $0x18] ss:$0 sps:$4 sm:$0x11]   ;;  %55 = vperm.xlu1 %333, %v34_v9   ;;  %v32_v12 = vld [vmem:[%s445_s2 + $0x8] sm:$0xff]  ;;  %v31_v13 = vld [vmem:[%s445_s2] sm:$0xff]  ;;  %310 = vmatprep.subr.mxu1 %v361_v14  ;;  %vm187_vm3 = vcmask 1041408  }
   0xa   :  { %324 = vmatprep.mubr.msk.f32.mxu1 %vm362_vm2, %v361_v14  ;;  %v179_v42 = vld [vmem:[%s446_s3] sm:$0x1]  ;;  %vm183_vm4 = vcmask 408576   ;;  %s363_s18 = smov [#allocation3]   ;;  %vm261_vm5 = vcmask 57344  }
   0xb   :  { %v180_v44 = vunpack.c.l.bf16 %v179_v42  ;;  %s269_s19 = sshll.u32 %s363_s18, 4  ;;  %s270_s19 = int_to_ptr.vmem [resolvable:$true] %s269_s19 }
   0xc   :  { %50 = vperm.xlu0 %332, %v33_v11   ;;  %s338_s3 = scalar_lea.vmem %s270_s19, 16  ;;  %s342_s20 = scalar_lea.vmem %s270_s19, 32 }
   0xd   :  { %45 = vperm.xlu1 %333, %v32_v12   ;;  %p339_p0 = scmp.ne.s32.totalorder %s270_s19, %s338_s3  ;;  %p343_p1 = scmp.lt.s32.totalorder %s270_s19, %s270_s19 }
   0xe   :  { %307 = vmatmul.mubr.msk.bf16.gmra.mxu0 %vm91_vm1, %v337_v10  ;;  %p344_p2 = scmp.lt.s32.totalorder %s342_s20, %s338_s3 }
  0x10   :  { %40 = vperm.xlu0 %332, %v31_v13   ;;  %p345_p3 = por %p344_p2, %p343_p1 }
  0x12   :  { %p346_p4 = pnand %p345_p3, %p339_p0 }
  0x7f   :  { %v71_v16 = vpop.permute.xlu0 %70  ;;  %v61_v19 = vpop.permute.xlu1 %60 }
  0x83   :  { %v66_v21 = vpop.permute.xlu0 %65 }
  0x84   :  { %v56_v26 = vpop.permute.xlu1 %55 }
  0x87   :  { %v51_v28 = vpop.permute.xlu0 %50 }
  0x88   :  { %v46_v34 = vpop.permute.xlu1 %45 }
  0x8b   :  { %v41_v37 = vpop.permute.xlu0 %40 }
  0xc6   :  { %v304_v15 = vpop.f32.mrf.mxu0 }
  0xc7   :  { %v151_v35 = vadd.f32 %v304_v15, %v51_v28 }
  0xc8   :  { %v142_v17 = vpop.f32.mrf.mxu0 }
  0xc9   :  { %v174_v40 = vmax.f32 %v151_v35, 0.0  ;;  %v143_v41 = vadd.f32 %v142_v17, %v41_v37 }
  0xca   :  { %v305_v18 = vpop.f32.mrf.mxu0 }
  0xcb   :  { %v154_v32 = vadd.f32 %v305_v18, %v56_v26  ;;  %v172_v45 = vmax.f32 %v143_v41, 0.0 }
  0xcc   :  { %v145_v20 = vpop.f32.mrf.mxu0 }
  0xcd   :  { %v175_v38 = vmax.f32 %v154_v32, 0.0  ;;  %v146_v39 = vadd.f32 %v145_v20, %v46_v34 }
  0xce   :  { %v308_v22 = vpop.f32.mrf.mxu0 }
  0xcf   :  { %v167_v23 = vadd.f32 %v308_v22, %v71_v16  ;;  %v173_v43 = vmax.f32 %v146_v39, 0.0 }
  0xd0   :  { %v158_v24 = vpop.f32.mrf.mxu0 }
  0xd1   :  { %v178_v25 = vmax.f32 %v167_v23, 0.0  ;;  %v159_v30 = vadd.f32 %v158_v24, %v61_v19 }
  0xd2   :  { %v309_v27 = vpop.f32.mrf.mxu0 }
  0xd3   :  { %311 = vmatpush3.msk.msra.mxu1 %vm187_vm3, %v178_v25  ;;  %v176_v36 = vmax.f32 %v159_v30, 0.0 }
  0xd4   :  { %v161_v29 = vpop.f32.mrf.mxu0  ;;  %312 = vmatprep.subr.mxu1 %v361_v14 }
  0xd5   :  { %v162_v31 = vadd.f32 %v161_v29, %v66_v21 }
  0xd7   :  { %v177_v33 = vmax.f32 %v162_v31, 0.0 }
  0xd9   :  { %313 = vmatpush3.msra.mxu1 %v177_v33 }
  0xda   :  { %314 = vmatprep.subr.mxu1 %v361_v14 }
  0xdb   :  { %315 = vmatpush3.msra.mxu1 %v176_v36 }
  0xdc   :  { %316 = vmatprep.subr.mxu1 %v361_v14 }
  0xdd   :  { %317 = vmatpush3.msra.mxu1 %v175_v38 }
  0xde   :  { %318 = vmatprep.subr.mxu1 %v361_v14 }
  0xdf   :  { %319 = vmatpush3.msra.mxu1 %v174_v40 }
  0xe0   :  { %320 = vmatprep.subr.mxu1 %v361_v14 }
  0xe1   :  { %321 = vmatpush3.msra.mxu1 %v173_v43 }
  0xe2   :  { %322 = vmatprep.subr.mxu1 %v361_v14 }
  0xe3   :  { %323 = vmatpush3.msra.mxu1 %v172_v45 }
  0xe4   :  { %325 = vmatmul.mubr.msk.f32.vlgmr.msra.gmra.mxu1 %vm183_vm4, %v180_v44 }
 0x1a4   :  { %v257_v47 = vpop.f32.mrf.mxu1 }
 0x1a5   :  { %v258_v48 = vadd.f32 %v257_v47, %v182_v46 }
 0x1a6   :  { %v326_v49 = vpop.f32.mrf.mxu1 }
 0x1a7   :  { %262 = vst.msk [vmem:[#allocation3] sm:$0x1] %vm261_vm5, %v258_v48 }
 0x1a8   :  { %349 = shalt.err (!%p346_p4)
}
 0x1a9   :  { %272 = dma.vmem_to_hbm [thread:$0]  %s270_s19, 16, %s448_s5, [#allocation4]  }
 0x1aa   :  { %358 = dma.done.wait [#allocation4], 16  }
 0x1ab   :  { %359 = vsyncadd [#allocation4], 4294967280 }
 0x1ac   :  { %276 = vsyncpa [#allocation4], 1 }

</bundles_post_ra>
